<compile_context>
chip_gen: v7x
topology: tpu7x:2x2x1
jax: 0.10.0
libtpu: 0.0.40
codegen_flags: <defaults>
</compile_context>

<pallas_src>
import math

import jax
import jax.numpy as jnp
from jax.experimental import pallas as pl
from jax.experimental.pallas import tpu as pltpu


def mclip_kernel(img_ref, ctxt_ref, hid_ref, mask_ref, w_ref, b_ref, scal_ref,
                 loss_ref, emb_acc):
    # img_ref   (B, D)      image embeddings          (resident across grid)
    # ctxt_ref  (B, D)      SigLIP text-tower output  (resident across grid)
    # hid_ref   (TB, L, H)  text_model hidden-state tile   (pipelined)
    # mask_ref  (TB, L)     attention-mask tile            (pipelined)
    # w_ref     (H, D), b_ref (1, D)   text_projection weights (resident)
    # scal_ref  (5,) SMEM: [log_scale_tt, bias_tt, log_scale_it, bias_it, lambda]
    # loss_ref  (1, 1) SMEM scalar output
    # emb_acc   (2B, D) VMEM scratch: rows [0,B)=text emb, rows [B,2B)=clip-text emb
    i = pl.program_id(0)
    n_tiles = pl.num_programs(0)
    B, D = img_ref.shape
    TB = hid_ref.shape[0]

    def l2n(x):
        # torch.norm(x, dim=1, keepdim=True); x / (n + 1e-8)
        n = jnp.sqrt(jnp.sum(x * x, axis=1, keepdims=True))
        # approx reciprocal -> EUP slot; VALU stays free for the rest.
        return x * pl.reciprocal(n + 1e-8, approx=True)

    # -------- step 0: normalize the resident clip-text embeddings once --------
    @pl.when(i == 0)
    def _():
        emb_acc[B:2 * B, :] = l2n(ctxt_ref[...])

    # -------- every step: masked mean pool -> Linear(H, D) -> L2 norm --------
    hidden = hid_ref[...].astype(jnp.float32)            # bf16 storage, f32 math
    mask = mask_ref[...].astype(jnp.float32)             # (TB, L)
    masked = hidden * mask[:, :, None]                   # (TB, L, H)
    summed = jnp.sum(masked, axis=1)                     # sublane-axis reduction
    denom = jnp.maximum(jnp.sum(mask, axis=1, keepdims=True), 1e-9)
    pooled = summed * pl.reciprocal(denom, approx=False) # (TB, H)
    proj = jnp.dot(pooled, w_ref[...],
                   preferred_element_type=jnp.float32) + b_ref[...]   # (TB, D)
    start = pl.multiple_of(i * TB, TB)
    emb_acc[pl.ds(start, TB), :] = l2n(proj)             # rows [0, B): text emb

    # -------- last step: both SigLIP losses from one fused (B, 2B) matmul -----
    @pl.when(i == n_tiles - 1)
    def _():
        img = l2n(img_ref[...])                          # (B, D)
        rhs = emb_acc[...]                               # (2B, D): [text; clip_text]
        # Contract on the last dim of both operands: no b.T, MXU fed directly.
        sim = jax.lax.dot_general(
            img, rhs, dimension_numbers=(((1,), (1,)), ((), ())),
            preferred_element_type=jnp.float32)          # (B, 2B)

        row = jax.lax.broadcasted_iota(jnp.int32, (B, 2 * B), 0)
        col = jax.lax.broadcasted_iota(jnp.int32, (B, 2 * B), 1)
        is_tt = col >= B                                 # right half: image vs clip-text
        is_pos = (col == row) | (col == row + B)         # matching (diagonal) pairs

        log_scale = jnp.where(is_tt, scal_ref[0], scal_ref[2])
        bias = jnp.where(is_tt, scal_ref[1], scal_ref[3])
        logits = jnp.exp(log_scale) * sim + bias
        # labels (+1 diag, -1 off-diag) folded into a sign flip — no (B,B) labels
        z = jnp.where(is_pos, logits, -logits)
        # stable log_sigmoid(z) = min(z, 0) - log(1 + exp(-|z|))
        logsig = jnp.minimum(z, 0.0) - jnp.log(1.0 + jnp.exp(-jnp.abs(z)))
        weight = jnp.where(is_tt, scal_ref[4], 1.0)      # IT + lambda * TT
        loss_ref[0, 0] = -jnp.sum(weight * logsig) / B


def mclip_forward(image_feat, clip_text_feat, text_hidden, attn_mask,
                  w_proj, b_proj, scalars, *, tile_b=None):
    B, D = image_feat.shape
    Bh, L, H = text_hidden.shape
    assert Bh == B
    itemsize = jnp.dtype(text_hidden.dtype).itemsize

    if tile_b is None:
        # Largest batch tile whose double-buffered hidden slab stays well inside
        # v7x's 64 MiB VMEM (v5e/v6e have more; smaller tiles + pipelining win).
        budget = 8 * 1024 * 1024
        if B * L * H * itemsize <= budget or B <= 8:
            tile_b = B
        else:
            tile_b = 8
            for cand in range(16, B, 8):
                if B % cand == 0 and cand * L * H * itemsize <= budget:
                    tile_b = cand
    assert B % tile_b == 0, (B, tile_b)
    assert tile_b % 8 == 0 or tile_b == B, (B, tile_b)   # (8,128) sublane rule
    n_tiles = B // tile_b

    grid_spec = pltpu.PrefetchScalarGridSpec(
        num_scalar_prefetch=0,
        grid=(n_tiles,),
        in_specs=[
            pl.BlockSpec((B, D), lambda i: (0, 0)),             # image_feat (resident)
            pl.BlockSpec((B, D), lambda i: (0, 0)),             # clip_text_feat (resident)
            pl.BlockSpec((tile_b, L, H), lambda i: (i, 0, 0)),  # text_hidden (pipelined)
            pl.BlockSpec((tile_b, L), lambda i: (i, 0)),        # attn_mask (pipelined)
            pl.BlockSpec((H, D), lambda i: (0, 0)),             # w_proj (resident)
            pl.BlockSpec((1, D), lambda i: (0, 0)),             # b_proj (resident)
            pl.BlockSpec(memory_space=pltpu.MemorySpace.SMEM),  # scalars
        ],
        out_specs=pl.BlockSpec(memory_space=pltpu.MemorySpace.SMEM),
        scratch_shapes=[pltpu.VMEM((2 * B, D), jnp.float32)],
    )

    flops = (2 * B * L * H          # masked pooling multiply/accumulate
             + 2 * B * H * D        # text projection matmul
             + 2 * B * (2 * B) * D  # fused similarity matmul
             + 10 * B * D)          # normalizations, scale/bias, weighting
    transcendentals = 2 * B * (2 * B) + 4 * B
    bytes_accessed = (B * L * H * itemsize + B * L * attn_mask.dtype.itemsize
                      + 2 * B * D * 4 + H * D * 4 + D * 4 + 4 * 5 + 4)

    return pl.pallas_call(
        mclip_kernel,
        out_shape=jax.ShapeDtypeStruct((1, 1), jnp.float32),
        grid_spec=grid_spec,
        compiler_params=pltpu.CompilerParams(
            dimension_semantics=("arbitrary",),       # loss needs all embeddings
            vmem_limit_bytes=48 * 1024 * 1024,        # fits v7x's 64 MiB per-TC VMEM
        ),
        cost_estimate=pl.CostEstimate(flops=flops,
                                      transcendentals=transcendentals,
                                      bytes_accessed=bytes_accessed),
    )(image_feat, clip_text_feat, text_hidden, attn_mask, w_proj, b_proj,
      scalars)


def mclip_reference(image_feat, clip_text_feat, text_hidden, attn_mask,
                    w_proj, b_proj, scalars):
    """Pure-JAX reference mirroring the PyTorch semantics."""
    hidden = text_hidden.astype(jnp.float32)
    masked = hidden * attn_mask[:, :, None]
    pooled = masked.sum(1) / jnp.maximum(attn_mask.sum(1, keepdims=True), 1e-9)
    proj = pooled @ w_proj + b_proj

    def l2n(x):
        return x / (jnp.linalg.norm(x, axis=1, keepdims=True) + 1e-8)

    img, ctxt, txt = l2n(image_feat), l2n(clip_text_feat), l2n(proj)
    B = img.shape[0]
    labels = 2.0 * jnp.eye(B) - 1.0

    def sl(a, b, log_scale, bias):
        logits = jnp.exp(log_scale) * (a @ b.T) + bias
        return -jnp.sum(jax.nn.log_sigmoid(labels * logits)) / B

    tt = sl(img, ctxt, scalars[0], scalars[1])
    it = sl(img, txt, scalars[2], scalars[3])
    return it + scalars[4] * tt


if __name__ == "__main__":
    # batch, seq, text hidden_size, projection_dim (lane-dense D/H; 2-step grid)
    B, L, H, D = 16, 8, 128, 128
    TB = 8
    key = jax.random.PRNGKey(0)
    k1, k2, k3, k4, k5, k6 = jax.random.split(key, 6)

    image_feat = jax.random.normal(k1, (B, D), jnp.float32)
    clip_text_feat = jax.random.normal(k2, (B, D), jnp.float32)
    # bf16 storage halves HBM traffic for the dominant tensor; upcast in-kernel.
    text_hidden = jax.random.normal(k3, (B, L, H), jnp.float32).astype(jnp.bfloat16)
    attn_mask = (jax.random.uniform(k4, (B, L)) > 0.3).astype(jnp.float32)
    attn_mask = attn_mask.at[:, 0].set(1.0)   # ensure >=1 valid token per row

    # deterministic synthetic parameters (nn.Linear(H, D), logit scale/bias)
    w_proj = jax.random.normal(k5, (H, D), jnp.float32) * 0.05
    b_proj = jax.random.normal(k6, (1, D), jnp.float32) * 0.05
    init_scale, init_bias, lambda_ = 10.0, -10.0, 0.1
    scalars = jnp.array(
        [math.log(init_scale), init_bias,        # logit_scale_tt, logit_bias_tt
         math.log(init_scale), init_bias,        # logit_scale_it, logit_bias_it
         lambda_], dtype=jnp.float32)

    loss = mclip_forward(image_feat, clip_text_feat, text_hidden, attn_mask,
                         w_proj, b_proj, scalars, tile_b=TB)
    jax.block_until_ready(loss)

    ref = mclip_reference(image_feat, clip_text_feat, text_hidden, attn_mask,
                          w_proj, b_proj, scalars)
    got, want = float(loss[0, 0]), float(ref)
    # tolerance covers the approx-reciprocal normalization (~1e-3 abs on a ~10 loss)
    assert abs(got - want) <= 5e-3 * max(1.0, abs(want)), (got, want)
    print("KERNEL_OK")
</pallas_src>

<mosaic_0001>
module attributes {stable_mosaic.version = 11 : i64} {
  func.func @mclip_kernel(%arg0: i32, %arg1: memref<16x128xf32, #tpu.memory_space<vmem>>, %arg2: memref<16x128xf32, #tpu.memory_space<vmem>>, %arg3: memref<8x8x128xbf16, #tpu.memory_space<vmem>>, %arg4: memref<8x8xf32, #tpu.memory_space<vmem>>, %arg5: memref<128x128xf32, #tpu.memory_space<vmem>>, %arg6: memref<1x128xf32, #tpu.memory_space<vmem>>, %arg7: memref<5xf32, #tpu.memory_space<smem>>, %arg8: memref<1x1xf32, #tpu.memory_space<smem>>, %arg9: memref<32x128xf32, #tpu.memory_space<vmem>>) attributes {dimension_semantics = [#tpu.dimension_semantics<arbitrary>], iteration_bounds = array<i64: 2>, scalar_prefetch = 0 : i64, scratch_operands = 1 : i64, tpu.core_type = #tpu.core_type<tc>, window_params = [{pipeline_mode = #tpu.pipeline_mode<synchronous>, transform_indices = @transform_0, window_bounds = array<i64: 16, 128>}, {pipeline_mode = #tpu.pipeline_mode<synchronous>, transform_indices = @transform_1, window_bounds = array<i64: 16, 128>}, {transform_indices = @transform_2, window_bounds = array<i64: 8, 8, 128>}, {transform_indices = @transform_3, window_bounds = array<i64: 8, 8>}, {pipeline_mode = #tpu.pipeline_mode<synchronous>, transform_indices = @transform_4, window_bounds = array<i64: 128, 128>}, {pipeline_mode = #tpu.pipeline_mode<synchronous>, transform_indices = @transform_5, window_bounds = array<i64: 1, 128>}, {transform_indices = @transform_6, window_bounds = array<i64: 5>}, {transform_indices = @transform_7, window_bounds = array<i64: 1, 1>}]} {
    %c0_i32 = arith.constant 0 : i32
    %0 = arith.cmpi eq, %arg0, %c0_i32 : i32
    %1 = arith.extui %0 : i1 to i32
    %c0_i32_0 = arith.constant 0 : i32
    %2 = arith.cmpi ne, %1, %c0_i32_0 : i32
    scf.if %2 {
      %c0_16 = arith.constant 0 : index
      %c0_17 = arith.constant 0 : index
      %38 = vector.load %arg2[%c0_16, %c0_17] : memref<16x128xf32, #tpu.memory_space<vmem>>, vector<16x128xf32>
      %39 = arith.mulf %38, %38 : vector<16x128xf32>
      %cst_18 = arith.constant dense<0.000000e+00> : vector<16xf32>
      %40 = vector.multi_reduction <add>, %39, %cst_18 [1] : vector<16x128xf32> to vector<16xf32>
      %41 = vector.shape_cast %40 : vector<16xf32> to vector<16x1xf32>
      %42 = math.sqrt %41 : vector<16x1xf32>
      %cst_19 = arith.constant 9.99999993E-9 : f32
      %43 = vector.broadcast %cst_19 : f32 to vector<16x1xf32>
      %44 = arith.addf %42, %43 : vector<16x1xf32>
      %45 = tpu.reciprocal %44 {approx = true} : vector<16x1xf32> -> vector<16x1xf32>
      %46 = vector.broadcast %45 : vector<16x1xf32> to vector<16x128xf32>
      %47 = arith.mulf %38, %46 : vector<16x128xf32>
      %c16 = arith.constant 16 : index
      %c0_20 = arith.constant 0 : index
      %48 = vector.load %arg9[%c16, %c0_20] : memref<32x128xf32, #tpu.memory_space<vmem>>, vector<16x128xf32>
      tpu.vector_store %arg9[%c16, %c0_20], %47 {strides = array<i32>} : memref<32x128xf32, #tpu.memory_space<vmem>>, vector<16x128xf32>,
    } else {
    }
    %c0 = arith.constant 0 : index
    %c0_1 = arith.constant 0 : index
    %c0_2 = arith.constant 0 : index
    %3 = vector.load %arg3[%c0, %c0_1, %c0_2] : memref<8x8x128xbf16, #tpu.memory_space<vmem>>, vector<8x8x128xbf16>
    %4 = arith.extf %3 : vector<8x8x128xbf16> to vector<8x8x128xf32>
    %c0_3 = arith.constant 0 : index
    %c0_4 = arith.constant 0 : index
    %5 = vector.load %arg4[%c0_3, %c0_4] : memref<8x8xf32, #tpu.memory_space<vmem>>, vector<8x8xf32>
    %6 = vector.shape_cast %5 : vector<8x8xf32> to vector<8x8x1xf32>
    %7 = vector.broadcast %6 : vector<8x8x1xf32> to vector<8x8x128xf32>
    %8 = arith.mulf %4, %7 : vector<8x8x128xf32>
    %cst = arith.constant dense<0.000000e+00> : vector<8x128xf32>
    %9 = vector.multi_reduction <add>, %8, %cst [1] : vector<8x8x128xf32> to vector<8x128xf32>
    %cst_5 = arith.constant dense<0.000000e+00> : vector<8xf32>
    %10 = vector.multi_reduction <add>, %5, %cst_5 [1] : vector<8x8xf32> to vector<8xf32>
    %11 = vector.shape_cast %10 : vector<8xf32> to vector<8x1xf32>
    %cst_6 = arith.constant 9.99999971E-10 : f32
    %12 = vector.broadcast %cst_6 : f32 to vector<8x1xf32>
    %13 = arith.maximumf %11, %12 : vector<8x1xf32>
    %14 = tpu.reciprocal %13 : vector<8x1xf32> -> vector<8x1xf32>
    %15 = vector.broadcast %14 : vector<8x1xf32> to vector<8x128xf32>
    %16 = arith.mulf %9, %15 : vector<8x128xf32>
    %c0_7 = arith.constant 0 : index
    %c0_8 = arith.constant 0 : index
    %17 = vector.load %arg5[%c0_7, %c0_8] : memref<128x128xf32, #tpu.memory_space<vmem>>, vector<128x128xf32>
    %cst_9 = arith.constant dense<0.000000e+00> : vector<8x128xf32>
    %18 = tpu.matmul %16, %17, %cst_9 {dimension_numbers = #tpu.dot_dimension_numbers<[1], [0], [0], [1], [0, 0, 1, 1], [], []>} : vector<8x128xf32>, vector<128x128xf32>, vector<8x128xf32> -> vector<8x128xf32>
    %c0_10 = arith.constant 0 : index
    %c0_11 = arith.constant 0 : index
    %19 = vector.load %arg6[%c0_10, %c0_11] : memref<1x128xf32, #tpu.memory_space<vmem>>, vector<1x128xf32>
    %20 = vector.broadcast %19 : vector<1x128xf32> to vector<8x128xf32>
    %21 = arith.addf %18, %20 : vector<8x128xf32>
    %c8_i32 = arith.constant 8 : i32
    %22 = arith.muli %arg0, %c8_i32 : i32
    %23 = tpu.assume_multiple %22, 8 : i32
    %24 = arith.mulf %21, %21 : vector<8x128xf32>
    %cst_12 = arith.constant dense<0.000000e+00> : vector<8xf32>
    %25 = vector.multi_reduction <add>, %24, %cst_12 [1] : vector<8x128xf32> to vector<8xf32>
    %26 = vector.shape_cast %25 : vector<8xf32> to vector<8x1xf32>
    %27 = math.sqrt %26 : vector<8x1xf32>
    %cst_13 = arith.constant 9.99999993E-9 : f32
    %28 = vector.broadcast %cst_13 : f32 to vector<8x1xf32>
    %29 = arith.addf %27, %28 : vector<8x1xf32>
    %30 = tpu.reciprocal %29 {approx = true} : vector<8x1xf32> -> vector<8x1xf32>
    %31 = vector.broadcast %30 : vector<8x1xf32> to vector<8x128xf32>
    %32 = arith.mulf %21, %31 : vector<8x128xf32>
    %33 = arith.index_cast %23 : i32 to index
    %c0_14 = arith.constant 0 : index
    %34 = vector.load %arg9[%33, %c0_14] : memref<32x128xf32, #tpu.memory_space<vmem>>, vector<8x128xf32>
    tpu.vector_store %arg9[%33, %c0_14], %32 {strides = array<i32>} : memref<32x128xf32, #tpu.memory_space<vmem>>, vector<8x128xf32>,
    %c1_i32 = arith.constant 1 : i32
    %35 = arith.cmpi eq, %arg0, %c1_i32 : i32
    %36 = arith.extui %35 : i1 to i32
    %c0_i32_15 = arith.constant 0 : i32
    %37 = arith.cmpi ne, %36, %c0_i32_15 : i32
    scf.if %37 {
      %c0_16 = arith.constant 0 : index
      %c0_17 = arith.constant 0 : index
      %38 = vector.load %arg1[%c0_16, %c0_17] : memref<16x128xf32, #tpu.memory_space<vmem>>, vector<16x128xf32>
      %39 = arith.mulf %38, %38 : vector<16x128xf32>
      %cst_18 = arith.constant dense<0.000000e+00> : vector<16xf32>
      %40 = vector.multi_reduction <add>, %39, %cst_18 [1] : vector<16x128xf32> to vector<16xf32>
      %41 = vector.shape_cast %40 : vector<16xf32> to vector<16x1xf32>
      %42 = math.sqrt %41 : vector<16x1xf32>
      %cst_19 = arith.constant 9.99999993E-9 : f32
      %43 = vector.broadcast %cst_19 : f32 to vector<16x1xf32>
      %44 = arith.addf %42, %43 : vector<16x1xf32>
      %45 = tpu.reciprocal %44 {approx = true} : vector<16x1xf32> -> vector<16x1xf32>
      %46 = vector.broadcast %45 : vector<16x1xf32> to vector<16x128xf32>
      %47 = arith.mulf %38, %46 : vector<16x128xf32>
      %c0_20 = arith.constant 0 : index
      %c0_21 = arith.constant 0 : index
      %48 = vector.load %arg9[%c0_20, %c0_21] : memref<32x128xf32, #tpu.memory_space<vmem>>, vector<32x128xf32>
      %cst_22 = arith.constant dense<0.000000e+00> : vector<16x32xf32>
      %49 = tpu.matmul %47, %48, %cst_22 {dimension_numbers = #tpu.dot_dimension_numbers<[1], [1], [0], [0], [0, 0, 1, 0], [], []>} : vector<16x128xf32>, vector<32x128xf32>, vector<16x32xf32> -> vector<16x32xf32>
      %50 = tpu.iota {dimensions = array<i32: 0>} : vector<16x32xi32>
      %51 = tpu.iota {dimensions = array<i32: 1>} : vector<16x32xi32>
      %c16_i32 = arith.constant 16 : i32
      %52 = vector.broadcast %c16_i32 : i32 to vector<16x32xi32>
      %53 = arith.cmpi sge, %51, %52 : vector<16x32xi32>
      %54 = arith.cmpi eq, %51, %50 : vector<16x32xi32>
      %c16_i32_23 = arith.constant 16 : i32
      %55 = vector.broadcast %c16_i32_23 : i32 to vector<16x32xi32>
      %56 = arith.addi %50, %55 : vector<16x32xi32>
      %57 = arith.cmpi eq, %51, %56 : vector<16x32xi32>
      %58 = arith.ori %54, %57 : vector<16x32xi1>
      %c0_24 = arith.constant 0 : index
      %59 = memref.load %arg7[%c0_24] : memref<5xf32, #tpu.memory_space<smem>>
      %c2 = arith.constant 2 : index
      %60 = memref.load %arg7[%c2] : memref<5xf32, #tpu.memory_space<smem>>
      %61 = vector.broadcast %59 : f32 to vector<16x32xf32>
      %62 = vector.broadcast %60 : f32 to vector<16x32xf32>
      %63 = arith.select %53, %61, %62 : vector<16x32xi1>, vector<16x32xf32>
      %c1 = arith.constant 1 : index
      %64 = memref.load %arg7[%c1] : memref<5xf32, #tpu.memory_space<smem>>
      %c3 = arith.constant 3 : index
      %65 = memref.load %arg7[%c3] : memref<5xf32, #tpu.memory_space<smem>>
      %66 = vector.broadcast %64 : f32 to vector<16x32xf32>
      %67 = vector.broadcast %65 : f32 to vector<16x32xf32>
      %68 = arith.select %53, %66, %67 : vector<16x32xi1>, vector<16x32xf32>
      %69 = math.exp %63 : vector<16x32xf32>
      %70 = arith.mulf %69, %49 : vector<16x32xf32>
      %71 = arith.addf %70, %68 : vector<16x32xf32>
      %cst_25 = arith.constant 0.000000e+00 : f32
      %72 = vector.broadcast %cst_25 : f32 to vector<16x32xf32>
      %73 = arith.subf %72, %71 : vector<16x32xf32>
      %74 = arith.select %58, %71, %73 : vector<16x32xi1>, vector<16x32xf32>
      %cst_26 = arith.constant 0.000000e+00 : f32
      %75 = vector.broadcast %cst_26 : f32 to vector<16x32xf32>
      %76 = arith.minimumf %74, %75 : vector<16x32xf32>
      %77 = math.absf %74 : vector<16x32xf32>
      %cst_27 = arith.constant 0.000000e+00 : f32
      %78 = vector.broadcast %cst_27 : f32 to vector<16x32xf32>
      %79 = arith.subf %78, %77 : vector<16x32xf32>
      %80 = math.exp %79 : vector<16x32xf32>
      %cst_28 = arith.constant 1.000000e+00 : f32
      %81 = vector.broadcast %cst_28 : f32 to vector<16x32xf32>
      %82 = arith.addf %81, %80 : vector<16x32xf32>
      %83 = math.log %82 : vector<16x32xf32>
      %84 = arith.subf %76, %83 : vector<16x32xf32>
      %c4 = arith.constant 4 : index
      %85 = memref.load %arg7[%c4] : memref<5xf32, #tpu.memory_space<smem>>
      %cst_29 = arith.constant 1.000000e+00 : f32
      %86 = vector.broadcast %85 : f32 to vector<16x32xf32>
      %87 = vector.broadcast %cst_29 : f32 to vector<16x32xf32>
      %88 = arith.select %53, %86, %87 : vector<16x32xi1>, vector<16x32xf32>
      %89 = arith.mulf %88, %84 : vector<16x32xf32>
      %90 = vector.shape_cast %89 : vector<16x32xf32> to vector<1x16x32xf32>
      %cst_30 = arith.constant dense<0.000000e+00> : vector<1xf32>
      %91 = vector.multi_reduction <add>, %90, %cst_30 [1, 2] : vector<1x16x32xf32> to vector<1xf32>
      %92 = vector.shape_cast %91 : vector<1xf32> to vector<1x1x1xf32>
      %93 = vector.extract %92[0, 0, 0] : f32 from vector<1x1x1xf32>
      %cst_31 = arith.constant 0.000000e+00 : f32
      %94 = arith.subf %cst_31, %93 : f32
      %cst_32 = arith.constant 1.600000e+01 : f32
      %95 = arith.divf %94, %cst_32 : f32
      %c0_33 = arith.constant 0 : index
      %c0_34 = arith.constant 0 : index
      %96 = memref.load %arg8[%c0_33, %c0_34] : memref<1x1xf32, #tpu.memory_space<smem>>
      memref.store %95, %arg8[%c0_33, %c0_34] : memref<1x1xf32, #tpu.memory_space<smem>>
    } else {
    }
    return
  }
  func.func @transform_0(%arg0: i32) -> (i32, i32) {
    %c0_i32 = arith.constant 0 : i32
    %c0_i32_0 = arith.constant 0 : i32
    %c0_i32_1 = arith.constant 0 : i32
    return %c0_i32, %c0_i32_0 : i32, i32
  }
  func.func @transform_1(%arg0: i32) -> (i32, i32) {
    %c0_i32 = arith.constant 0 : i32
    %c0_i32_0 = arith.constant 0 : i32
    %c0_i32_1 = arith.constant 0 : i32
    return %c0_i32, %c0_i32_0 : i32, i32
  }
  func.func @transform_2(%arg0: i32) -> (i32, i32, i32) {
    %c0_i32 = arith.constant 0 : i32
    %c0_i32_0 = arith.constant 0 : i32
    %c0_i32_1 = arith.constant 0 : i32
    return %arg0, %c0_i32, %c0_i32_0 : i32, i32, i32
  }
  func.func @transform_3(%arg0: i32) -> (i32, i32) {
    %c0_i32 = arith.constant 0 : i32
    %c0_i32_0 = arith.constant 0 : i32
    return %arg0, %c0_i32 : i32, i32
  }
  func.func @transform_4(%arg0: i32) -> (i32, i32) {
    %c0_i32 = arith.constant 0 : i32
    %c0_i32_0 = arith.constant 0 : i32
    %c0_i32_1 = arith.constant 0 : i32
    return %c0_i32, %c0_i32_0 : i32, i32
  }
  func.func @transform_5(%arg0: i32) -> (i32, i32) {
    %c0_i32 = arith.constant 0 : i32
    %c0_i32_0 = arith.constant 0 : i32
    %c0_i32_1 = arith.constant 0 : i32
    return %c0_i32, %c0_i32_0 : i32, i32
  }
  func.func @transform_6(%arg0: i32) -> i32 {
    %c0_i32 = arith.constant 0 : i32
    %c0_i32_0 = arith.constant 0 : i32
    return %c0_i32 : i32
  }
  func.func @transform_7(%arg0: i32) -> (i32, i32) {
    %c0_i32 = arith.constant 0 : i32
    %c0_i32_0 = arith.constant 0 : i32
    %c0_i32_1 = arith.constant 0 : i32
    return %c0_i32, %c0_i32_0 : i32, i32
  }
}

</mosaic_0001>

<bundles_post_ra>
// kernel: tpu_custom_call.1
= control target key start
LH: loop header
LB: loop body
LE: loop exit
PB: predicated region body
PF: predicated region fallthrough
CT: control target
= control target key end

     0   :  { %s1703_s0 = inlined_call_operand.vmem [shape: f32[16,128], index: 0, kind: input, shape index: {}]   ;;  %s1704_s1 = inlined_call_operand.hbm [shape: f32[16,128], index: 1, kind: input, shape index: {}]   ;;  %s1705_s2 = inlined_call_operand.hbm [shape: bf16[16,8,128], index: 2, kind: input, shape index: {}]   ;;  %s1706_s3 = inlined_call_operand.vmem [shape: f32[16,8], index: 3, kind: input, shape index: {}]   ;;  %s1707_s4 = inlined_call_operand.hbm [shape: f32[128,128], index: 4, kind: input, shape index: {}]   ;;  %s1708_s5 = inlined_call_operand.vmem [shape: f32[1,128], index: 5, kind: input, shape index: {}]   ;;  %s1709_s6 = inlined_call_operand.vmem [shape: f32[5], index: 6, kind: input, shape index: {}]   ;;  %s1710_s7 = inlined_call_operand.hbm [shape: f32[1,1], index: 7, kind: output, shape index: {}]  }
   0x1   :  { %1717 = sst [smem:[#allocation19_spill]] %s1709_s6 }
   0x2   :  { %12 = vsyncpa [#allocation4], 0 }
   0x3   :  { %13 = vsyncpa [#allocation8], 0 }
   0x4   :  { %15 = vsyncpa [#allocation8 + $0x1], 0 }
   0x5   :  { %16 = vsyncpa [#allocation6], 0 }
   0x6   :  { %17 = vsyncpa [#allocation5], 0  ;;  %s1451_s24 = smov 0   ;;  %s1453_s25 = smov 0  }
   0x7   :  { %s1455_s26 = smov 0   ;;  %s1457_s27 = smov 0  }
   0x8 LB: > { %s1470_s28 = sadd.s32 4294967295, %s1397_s27   ;;  %s1473_s29 = sadd.s32 1, %s1397_s27   ;;  %s1397_s27 = sphi %s1457_s27, %s1737_s27   ;;  %s1393_s26 = sphi %s1455_s26, %s1741_s26   ;;  %s1389_s25 = sphi %s1453_s25, %s1740_s25   ;;  %s1385_s24 = sphi %s1451_s24, %s1739_s24  }
   0x9   : > { %1718 = sst [smem:[#allocation17_spill]] %s1473_s29  ;;  %s69_s30 = ssub.s32 %s1397_s27, %s1473_s29 }
   0xa   : > { %s72_s8 = sadd.s32 1, %s1393_s26  ;;  %p70_p0 = scmp.eq.s32.totalorder %s69_s30, 0 }
   0xb   : > { %p79_p1 = scmp.ne.s32.totalorder %s1393_s26, %s1389_s25  ;;  %p80_p2 = scmp.eq.s32.totalorder %s1397_s27, 0 }
   0xc   : > { %p85_p3 = scmp.ne.s32.totalorder %s1389_s25, %s1385_s24  ;;  %p1711_p5 = scmp.eq.s32.totalorder %s1470_s28, 0 }
   0xd   : > { %s1483_s9 = scalar_select %p70_p0, %s1393_s26, %s72_s8  }
   0xe   : > { %p1485_p4 = por %p80_p2, %p79_p1  ;;  %p969_p6 = scmp.ge.s32.totalorder %s1397_s27, 1 }
   0xf   : > { %1719 = sst [smem:[#allocation18_spill]] %s1483_s9  ;;  %p206_p7 = scmp.lt.s32.totalorder %s1397_s27, 3 }
  0x10   : > { %p1494_p8 = por %p1711_p5, %p85_p3  ;;  %s1399_s13 = smov [#allocation9]  }
  0x11   : > { %p1499_p10 = pnand %p969_p6, %p206_p7  ;;  %s234_s14 = sshll.u32 %s1399_s13, 4  ;;  %s235_s14 = int_to_ptr.vmem [resolvable:$true] %s234_s14 }
  0x12   : > { %s1721_s11 = scalar_select %p1494_p8, 1, 0 }
  0x13   : > { %s1722_s12 = scalar_select %p1499_p10, 1, 0 }
  0x14   : > { %p1136_p11 = pneg %p1499_p10  ;;  %p1153_p13 = scmp.lt.s32.totalorder %s1397_s27, 2 }
  0x15   : > { %s1724_s6 = sld [smem:[#allocation19_spill]]  ;;  %s1234_s22 = scalar_lea.hbm %s1707_s4, 2048 }
  0x16   : > { %p1507_p12 = pnand %p1136_p11, %p1711_p5  ;;  %p1517_p0 = pnand %p1153_p13, %p1485_p4 }
  0x17   : > { %p1235_p1 = scmp.ne.s32.totalorder %s1707_s4, %s1234_s22  ;;  %p1241_p6 = scmp.lt.u32.totalorder %s1234_s22, %s1707_s4 }
  0x18   : > { %s1725_s19 = scalar_select %p1517_p0, 1, 0 }
  0x19   : > { %p1529_p2 = pneg %p1507_p12 }
  0x1b   : > { %s251_s18 = sshll.u32 %s1724_s6, 4  ;;  %p1237_p3 = pnand %p1529_p2, %p1235_p1  ;;  %s1545_s18 = int_to_ptr.vmem [resolvable:$true] %s251_s18 }
  0x1d   : > { %p1238_p4 = pneg %p1237_p3 }
  0x1f   : > { %p1243_p7 = pnand %p1241_p6, %p1238_p4 }
  0x21   : > { %1246 = shalt.err (!%p1243_p7)
}
  0x22   : > { %s1247_s13 = scalar_lea.vmem %s235_s14, 2048  ;;  %p1255_p5 = scmp.lt.s32.totalorder %s235_s14, %s235_s14 }
  0x23   : > { %p1248_p11 = scmp.ne.s32.totalorder %s235_s14, %s1247_s13  ;;  %p1256_p8 = scmp.lt.s32.totalorder %s1247_s13, %s1247_s13 }
  0x25   : > { %p1250_p13 = pnand %p1248_p11, %p1529_p2  ;;  %p1257_p10 = por %p1256_p8, %p1255_p5 }
  0x27   : > { %p1251_p9 = pneg %p1250_p13 }
  0x29   : > { %p1258_p0 = pnand %p1257_p10, %p1251_p9 }
  0x2b   : > { %1261 = shalt.err (!%p1258_p0)
}
  0x2c   : > { %s1400_s16 = smov 128   ;;  %s1401_s17 = smov 8  }
  0x2d   : > { %1142 = dma.hbm_to_vmem [thread:$0]  (!%p1507_p12), %s1707_s4, 2048, %s235_s14, [#allocation8], %s1400_s16, %s1400_s16, %s1401_s17  }
  0x2e   : > { %s1402_s22 = smov [#allocation3]   ;;  %s1262_s10 = scalar_lea.hbm %s1704_s1, 256 }
  0x2f   : > { %s221_s23 = sshll.u32 %s1402_s22, 4  ;;  %p1263_p5 = scmp.ne.s32.totalorder %s1704_s1, %s1262_s10  ;;  %s222_s23 = int_to_ptr.vmem [resolvable:$true] %s221_s23 }
  0x30   : > { %p1269_p10 = scmp.lt.u32.totalorder %s1262_s10, %s1704_s1 }
  0x31   : > { %p1265_p8 = pnand %p1263_p5, %p1529_p2 }
  0x33   : > { %p1266_p9 = pneg %p1265_p8 }
  0x35   : > { %p1271_p0 = pnand %p1269_p10, %p1266_p9 }
  0x37   : > { %1274 = shalt.err (!%p1271_p0)
}
  0x38   : > { %s1275_s14 = scalar_lea.vmem %s222_s23, 256  ;;  %p1283_p6 = scmp.lt.s32.totalorder %s222_s23, %s222_s23 }
  0x39   : > { %p1276_p1 = scmp.ne.s32.totalorder %s222_s23, %s1275_s14  ;;  %p1284_p7 = scmp.lt.s32.totalorder %s1275_s14, %s1275_s14 }
  0x3b   : > { %p1278_p3 = pnand %p1276_p1, %p1529_p2  ;;  %p1285_p11 = por %p1284_p7, %p1283_p6 }
  0x3d   : > { %p1279_p4 = pneg %p1278_p3 }
  0x3f   : > { %p1286_p13 = pnand %p1285_p11, %p1279_p4 }
  0x41   : > { %1289 = shalt.err (!%p1286_p13)
}
  0x42   : > { %1139 = dma.hbm_to_vmem [thread:$0]  (!%p1507_p12), %s1704_s1, 256, %s222_s23, [#allocation4], %s1400_s16, %s1400_s16, %s1401_s17  }
  0x43   : > { %s262_s29 = sand.u32 1, %s1397_s27   ;;  %s1290_s9 = scalar_lea.vmem %s1545_s18, 16 }
  0x44   : > { %p1291_p5 = scmp.ne.s32.totalorder %s1545_s18, %s1290_s9  ;;  %p1298_p10 = scmp.lt.s32.totalorder %s1545_s18, %s1545_s18 }
  0x45   : > { %p1299_p0 = scmp.lt.s32.totalorder %s1290_s9, %s1290_s9 }
  0x46   : > { %p1293_p8 = pnand %p1291_p5, %p1529_p2 }
  0x47   : > { %p1300_p1 = por %p1299_p0, %p1298_p10 }
  0x48   : > { %p1294_p9 = pneg %p1293_p8 }
  0x4a   : > { %p1301_p3 = pnand %p1300_p1, %p1294_p9 }
  0x4c   : > { %1304 = shalt.err (!%p1301_p3)
}
  0x4d   : > { %s1403_s21 = smov [#allocation10]   ;;  %s264_s16 = sand.u32 1, %s1393_s26  }
  0x4e   : > { %1145 = dma.vmem_to_smem (!%p1507_p12), %s1545_s18, 16, %s1403_s21, [#allocation6]  }
  0x4f   : > { %s974_s17 = sshll.u32 %s264_s16, 5  ;;  %s995_s30 = sshll.u32 %s1397_s27, 9 }
  0x50   : > { %s1580_s24 = scalar_lea.hbm %s1705_s2, %s995_s30  ;;  %s266_s8 = scalar_lea.vmem [#allocation7], %s974_s17 }
  0x51   : > { %s273_s15 = sshll.u32 %s266_s8, 4  ;;  %s1584_s10 = scalar_lea.sflag [#allocation8], %s262_s29  ;;  %s1582_s15 = int_to_ptr.vmem [resolvable:$true] %s273_s15 }
  0x52   : > { %s1305_s13 = scalar_lea.hbm %s1580_s24, 512  ;;  %p1727_p2 = scmp.ne.s32.totalorder %s1725_s19, 0 }
  0x53   : > { %p1306_p12 = scmp.ne.s32.totalorder %s1580_s24, %s1305_s13  ;;  %s1310_s14 = scalar_lea.hbm %s1705_s2, 1024 }
  0x54   : > { %p1307_p4 = pneg %p1727_p2  ;;  %p1311_p11 = scmp.lt.u32.totalorder %s1580_s24, %s1705_s2 }
  0x55   : > { %p1312_p13 = scmp.lt.u32.totalorder %s1310_s14, %s1305_s13  ;;  %p1314_p8 = scmp.lt.u32.totalorder %s1305_s13, %s1580_s24 }
  0x56   : > { %p1308_p6 = pnand %p1307_p4, %p1306_p12 }
  0x57   : > { %p1313_p5 = por %p1312_p13, %p1311_p11 }
  0x58   : > { %p1309_p7 = pneg %p1308_p6 }
  0x59   : > { %p1315_p9 = por %p1314_p8, %p1313_p5 }
  0x5b   : > { %p1316_p10 = pnand %p1315_p9, %p1309_p7 }
  0x5d   : > { %1319 = shalt.err (!%p1316_p10)
}
  0x5e   : > { %s1320_s29 = scalar_lea.vmem %s1582_s15, 512  ;;  %s1404_s9 = smov [#allocation7]  }
  0x5f   : > { %p1321_p0 = scmp.ne.s32.totalorder %s1582_s15, %s1320_s29  ;;  %s1325_s21 = sshll.u32 %s1404_s9, 4  ;;  %s1326_s21 = int_to_ptr.vmem [resolvable:$false] %s1325_s21 }
  0x60   : > { %s1327_s16 = scalar_lea.vmem %s1326_s21, 1024  ;;  %p1328_p12 = scmp.lt.s32.totalorder %s1582_s15, %s1326_s21 }
  0x61   : > { %p1323_p1 = pnand %p1321_p0, %p1307_p4  ;;  %p1329_p6 = scmp.lt.s32.totalorder %s1327_s16, %s1320_s29 }
  0x63   : > { %p1324_p3 = pneg %p1323_p1  ;;  %p1330_p11 = por %p1329_p6, %p1328_p12 }
  0x65   : > { %p1331_p13 = pnand %p1330_p11, %p1324_p3 }
  0x67   : > { %1334 = shalt.err (!%p1331_p13)
}
  0x68   : > { %s1405_s17 = smov 64   ;;  %s1406_s30 = smov 4  }
  0x69   : > { %1149 = dma.hbm_to_vmem [thread:$0]  (!%p1727_p2), %s1580_s24, 512, %s1582_s15, %s1584_s10, %s1405_s17, %s1405_s17, %s1406_s30  }
  0x6a   : > { %p1728_p4 = scmp.ne.s32.totalorder %s1722_s12, 0 }
  0x6b   : > { %p1729_p7 = scmp.eq.s32.totalorder (!%p1728_p4), %s1470_s28, 0 }
  0x6c   : > { %292 = sbr.rel (%p1728_p4) target bundleno = 1382 (0x566), region = 48 }
  0x73   : > { %1364 = dma.done.wait (%p1729_p7), [#allocation4], 256   ;;  %p1730_p5 = pmov %p1729_p7 }
  0x74   : > { %s298_s22 = sand.u32 1, %s1470_s28   ;;  %s300_s23 = sand.u32 1, %s1389_s25  }
  0x75   : > { %1366 = vsyncadd (%p1730_p5), [#allocation4], 4294967040  ;;  %s979_s8 = sshll.u32 %s300_s23, 5  ;;  %s299_s13 = scalar_lea.sflag [#allocation8], %s298_s22 }
  0x76   : > { %s1620_s27 = scalar_lea.vmem [#allocation7], %s979_s8  ;;  %p1731_p8 = scmp.ne.s32.totalorder %s1721_s11, 0 }
  0x78   : > { %1368 = dma.done.wait (%p1731_p8), %s299_s13, 512  }
  0x79   : > { %1370 = vsyncadd (%p1731_p8), %s299_s13, 4294966784  ;;  %p1732_p2 = pmov %p1730_p5 }
  0x7b   : > { %1372 = dma.done.wait (%p1732_p2), [#allocation8], 2048   ;;  %p1733_p9 = pmov %p1732_p2 }
  0x7c   : > { %p1734_p10 = pmov %p1732_p2 }
  0x7d   : > { %1374 = vsyncadd (%p1733_p9), [#allocation8], 4294965248 }
  0x7e   : > { %1376 = dma.done.wait (%p1734_p10), [#allocation6], 16   ;;  %p1735_p0 = pmov %p1732_p2 }
  0x80   : > { %1378 = vsyncadd (%p1735_p0), [#allocation6], 4294967280 }
  0x81   : > { %315 = sfence }
  0x82   : > { %p342_p1 = scmp.lt.s32.totalorder %s1470_s28, 1  ;;  %p1736_p3 = scmp.ne.s32.totalorder %s1470_s28, 0 }
  0x83   : > { %v350_v0 = vld [vmem:[#allocation3] sm:$0xff] (!%p1736_p3)  ;;  %v351_v1 = vld [vmem:[#allocation3 + $0x8] sm:$0xff] (!%p1736_p3) }
  0x84   : > { %s343_s12 = scalar_select %p342_p1, %s1470_s28, 1 }
  0x85   : > { %349 = sbr.rel (%p1736_p3) target bundleno = 312 (0x138), region = 68  ;;  %v352_v2 = vmul.f32 (!%p1736_p3), %v350_v0, %v350_v0  ;;  %v353_v3 = vmul.f32 (!%p1736_p3), %v351_v1, %v351_v1 }
  0x86   : > { %s982_s19 = sshll.u32 %s343_s12, 3 }
  0x87   : > { %s1639_s15 = scalar_lea.vmem %s1706_s3, %s982_s19  ;;  %354 = vadd.xlane.f32.xlu0 (!%p1736_p3), %v352_v2 }
  0x8b   : > { %356 = vadd.xlane.f32.xlu0 (!%p1736_p3), %v353_v3 }
 0x114   : > { %v355_v4 = vpop.xlane.xlu0 %354 }
 0x115   : > { %1202 = vrsqrt.f32 %v355_v4  ;;  %vm360_vm0 = vcmp.eq.f32.partialorder %v355_v4, inf  ;;  %v363_v8 = vand.u32 2147483648, %v355_v4  ;;  %vm362_vm1 = vcmp.eq.f32.partialorder %v355_v4, 0.0 }
 0x118   : > { %v357_v5 = vpop.xlane.xlu0 %356 }
 0x119   : > { %1204 = vrsqrt.f32 %v357_v5  ;;  %vm367_vm2 = vcmp.eq.f32.partialorder %v357_v5, inf  ;;  %v370_v14 = vand.u32 2147483648, %v357_v5  ;;  %vm369_vm3 = vcmp.eq.f32.partialorder %v357_v5, 0.0 }
 0x11f   : > { %v1203_v6 = vpop.eup %1202 }
 0x120   : > { %v359_v7 = vmul.f32 %v1203_v6, %v355_v4 }
 0x122   : > { %v361_v9 = vsel %vm360_vm0, %v355_v4, %v359_v7 }
 0x123   : > { %v1205_v10 = vpop.eup %1204  ;;  %v364_v11 = vsel %vm362_vm1, %v363_v8, %v361_v9 }
 0x124   : > { %v372_v12 = vadd.f32 1e-08, %v364_v11  ;;  %v366_v13 = vmul.f32 %v1205_v10, %v357_v5 }
 0x126   : > { %1206 = vrcp.f32 %v372_v12  ;;  %v368_v15 = vsel %vm367_vm2, %v357_v5, %v366_v13 }
 0x127   : > { %v371_v16 = vsel %vm369_vm3, %v370_v14, %v368_v15 }
 0x128   : > { %v373_v17 = vadd.f32 1e-08, %v371_v16 }
 0x12a   : > { %1208 = vrcp.f32 %v373_v17 }
 0x130   : > { %v1207_v18 = vpop.eup %1206 }
 0x131   : > { %v376_v19 = vmul.f32 %v1207_v18, %v350_v0 }
 0x133   : > { %378 = vst [vmem:[#allocation2 + $0x10] sm:$0xff] %v376_v19 }
 0x134   : > { %v1209_v20 = vpop.eup %1208 }
 0x135   : > { %v377_v21 = vmul.f32 %v1209_v20, %v351_v1 }
 0x137   : > { %379 = vst [vmem:[#allocation2 + $0x18] sm:$0xff] %v377_v21 }
 0x138 PF: > { %v396_v22 = vld [vmem:[%s1639_s15] sm:$0xff]  ;;  %vm509_vm4 = vcmask 64512   ;;  %v397_v23 = vlaneseq  ;;  %v539_v31 = vld [vmem:[#allocation9] sm:$0xff]  ;;  %v540_v32 = vld [vmem:[#allocation9 + $0x8] sm:$0xff]  ;;  %v1407_v36 = vmov 0.0|0.0   ;;  %vm1408_vm5 = vmmov 0  }
 0x139   : > { %v510_v24 = vsel %vm509_vm4, %v396_v22, 0.0  ;;  %v1085_v35 = vpack.c.bf16 %v540_v32, %v539_v31  ;;  %1084 = vmatprep.subr.bf16.mxu0 %v1407_v36  ;;  %v541_v37 = vld [vmem:[#allocation9 + $0x10] sm:$0xff]  ;;  %v542_v38 = vld [vmem:[#allocation9 + $0x18] sm:$0xff]  ;;  %v543_v43 = vld [vmem:[#allocation9 + $0x20] sm:$0xff]  ;;  %v1409_v3 = vmov 0.0   ;;  %vm571_vm6 = vcmask 1041409  }
 0x13a   : > { %511 = vadd.xlane.f32.xlu0 %v510_v24  ;;  %v1645_v25 = vshrl.u32 %v397_v23, 7  ;;  %v1088_v42 = vpack.c.bf16 %v542_v38, %v541_v37  ;;  %v544_v44 = vld [vmem:[#allocation9 + $0x28] sm:$0xff]  ;;  %v545_v49 = vld [vmem:[#allocation9 + $0x30] sm:$0xff]  ;;  %v546_v50 = vld [vmem:[#allocation9 + $0x38] sm:$0xff]  ;;  %1070 = vmatprep.mubr.msk.f32.mxu0 %vm1408_vm5, %v1409_v3  ;;  %vm574_vm7 = vcmask 1042434   ;;  %vm577_vm8 = vcmask 1043459  }
 0x13b   : > { %1086 = vmatpush3.bf16.msra.mxu0 %v1085_v35  ;;  %v1091_v48 = vpack.c.bf16 %v544_v44, %v543_v43  ;;  %v1094_v53 = vpack.c.bf16 %v546_v50, %v545_v49  ;;  %v547_v54 = vld [vmem:[#allocation9 + $0x40] sm:$0xff]  ;;  %v548_v55 = vld [vmem:[#allocation9 + $0x48] sm:$0xff]  ;;  %v549_v58 = vld [vmem:[#allocation9 + $0x50] sm:$0xff]  ;;  %vm580_vm9 = vcmask 1044484   ;;  %vm583_vm10 = vcmask 1045509   ;;  %s985_s14 = sshll.u32 %s1470_s28, 3 }
 0x13c   : > { %v413_v26 = vsub.s32 2, %v1645_v25  ;;  %v399_v27 = vsub.s32 0, %v1645_v25  ;;  %v420_v30 = vsub.s32 3, %v1645_v25  ;;  %v427_v34 = vsub.s32 4, %v1645_v25  ;;  %1087 = vmatprep.subr.bf16.mxu0 %v1407_v36  ;;  %v550_v59 = vld [vmem:[#allocation9 + $0x58] sm:$0xff]  ;;  %v551_v61 = vld [vmem:[#allocation9 + $0x60] sm:$0xff] }
 0x13d   : > { %v434_v40 = vsub.s32 5, %v1645_v25  ;;  %v406_v41 = vsub.s32 1, %v1645_v25  ;;  %v441_v46 = vsub.s32 6, %v1645_v25  ;;  %v448_v52 = vsub.s32 7, %v1645_v25  ;;  %v552_v62 = vld [vmem:[#allocation9 + $0x68] sm:$0xff]  ;;  %v553_v0 = vld [vmem:[#allocation9 + $0x70] sm:$0xff] }
 0x13e   : > { %v414_v28 = vrot.slane %v396_v22, %v413_v26  ;;  %v400_v29 = vrot.slane %v396_v22, %v399_v27  ;;  %v421_v33 = vrot.slane %v396_v22, %v420_v30  ;;  %v428_v39 = vrot.slane %v396_v22, %v427_v34  ;;  %v554_v1 = vld [vmem:[#allocation9 + $0x78] sm:$0xff]  ;;  %v1012_v6 = vld [vmem:[%s1620_s27 + $0x8] sm:$0xff]   ;;  %v997_v7 = vld [vmem:[%s1620_s27] sm:$0xff]   ;;  %s676_s6 = scalar_lea.vmem [#allocation2], %s985_s14  ;;  %p986_p12 = scmp.ne.s32.totalorder %s1470_s28, 1 }
 0x13f   : > { %1089 = vmatpush3.bf16.msra.mxu0 %v1088_v42  ;;  %v435_v45 = vrot.slane %v396_v22, %v434_v40  ;;  %v407_v47 = vrot.slane %v396_v22, %v406_v41  ;;  %v442_v51 = vrot.slane %v396_v22, %v441_v46  ;;  %v449_v56 = vrot.slane %v396_v22, %v448_v52  ;;  %v1013_v9 = vld [vmem:[%s1620_s27 + $0x10] sm:$0xff]   ;;  %v1014_v19 = vld [vmem:[%s1620_s27 + $0x18] sm:$0xff]   ;;  %s803_s16 = sld [smem:[#allocation10]] (!%p986_p12)  ;;  %s987_s17 = sld [smem:[#allocation10 + $0x2]] (!%p986_p12) }
 0x140   : > { %416 = vbcast.lane.b32.xlu1 %v414_v28, 256  ;;  %1090 = vmatprep.subr.bf16.mxu0 %v1407_v36  ;;  %v1097_v57 = vpack.c.bf16 %v548_v55, %v547_v54  ;;  %v1100_v60 = vpack.c.bf16 %v550_v59, %v549_v58  ;;  %v1103_v63 = vpack.c.bf16 %v552_v62, %v551_v61  ;;  %v1002_v10 = vunpack.c.l.bf16 %v1012_v6  ;;  %s988_s30 = sld [smem:[#allocation10 + $0x1]] (!%p986_p12)  ;;  %s989_s22 = sld [smem:[#allocation10 + $0x3]] (!%p986_p12) }
 0x141   : > { %v1106_v2 = vpack.c.bf16 %v554_v1, %v553_v0  ;;  %v998_v11 = vunpack.c.l.bf16 %v997_v7  ;;  %v1003_v12 = vunpack.c.h.bf16 %v1012_v6  ;;  %v1006_v13 = vunpack.c.l.bf16 %v1013_v9  ;;  %s990_s23 = sld [smem:[#allocation10 + $0x4]] (!%p986_p12) }
 0x142   : > { %v1007_v17 = vunpack.c.h.bf16 %v1013_v9  ;;  %v1010_v27 = vunpack.c.l.bf16 %v1014_v19  ;;  %vm586_vm11 = vcmask 1046534   ;;  %vm589_vm12 = vcmask 1047559  }
 0x143   : > { %1092 = vmatpush3.bf16.msra.mxu0 %v1091_v48 }
 0x144   : > { %402 = vbcast.lane.b32.xlu1 %v400_v29, 256  ;;  %1093 = vmatprep.subr.bf16.mxu0 %v1407_v36 }
 0x147   : > { %1095 = vmatpush3.bf16.msra.mxu0 %v1094_v53 }
 0x148   : > { %423 = vbcast.lane.b32.xlu1 %v421_v33, 256  ;;  %1096 = vmatprep.subr.bf16.mxu0 %v1407_v36 }
 0x14b   : > { %1098 = vmatpush3.bf16.msra.mxu0 %v1097_v57 }
 0x14c   : > { %430 = vbcast.lane.b32.xlu1 %v428_v39, 256  ;;  %1099 = vmatprep.subr.bf16.mxu0 %v1407_v36  ;;  %v999_v39 = vunpack.c.h.bf16 %v997_v7 }
 0x14f   : > { %1101 = vmatpush3.bf16.msra.mxu0 %v1100_v60 }
 0x150   : > { %437 = vbcast.lane.b32.xlu1 %v435_v45, 256  ;;  %409 = vbcast.lane.b32.xlu0 %v407_v47, 256 }
 0x151   : > { %1102 = vmatprep.subr.bf16.mxu0 %v1407_v36 }
 0x153   : > { %1104 = vmatpush3.bf16.msra.mxu0 %v1103_v63 }
 0x154   : > { %444 = vbcast.lane.b32.xlu1 %v442_v51, 256  ;;  %1105 = vmatprep.subr.bf16.mxu0 %v1407_v36  ;;  %v1011_v36 = vunpack.c.h.bf16 %v1014_v19 }
 0x157   : > { %1107 = vmatpush3.bf16.msra.mxu0 %v1106_v2 }
 0x158   : > { %451 = vbcast.lane.b32.xlu1 %v449_v56, 256 }
 0x1b2   : > { %v417_v4 = vpop.permute.xlu1 %416 }
 0x1b3   : > { %v455_v15 = vmul.f32 %v1002_v10, %v417_v4 }
 0x1b5   : > { %v473_v22 = vrot.slane %v455_v15, 4 }
 0x1b6   : > { %v403_v5 = vpop.permute.xlu1 %402 }
 0x1b7   : > { %v453_v16 = vmul.f32 %v998_v11, %v403_v5  ;;  %v474_v32 = vadd.f32 %v473_v22, %v455_v15 }
 0x1b9   : > { %v461_v24 = vrot.slane %v453_v16, 4  ;;  %v475_v44 = vrot.slane %v474_v32, 2 }
 0x1ba   : > { %v424_v8 = vpop.permute.xlu1 %423 }
 0x1bb   : > { %v456_v18 = vmul.f32 %v1003_v12, %v424_v8  ;;  %v462_v33 = vadd.f32 %v461_v24, %v453_v16  ;;  %v476_v56 = vadd.f32 %v475_v44, %v474_v32 }
 0x1bd   : > { %v479_v28 = vrot.slane %v456_v18, 4  ;;  %v463_v45 = vrot.slane %v462_v33, 2  ;;  %v477_v2 = vrot.slane %v476_v56, 1 }
 0x1be   : > { %v431_v14 = vpop.permute.xlu1 %430 }
 0x1bf   : > { %v457_v20 = vmul.f32 %v1006_v13, %v431_v14  ;;  %v480_v37 = vadd.f32 %v479_v28, %v456_v18  ;;  %v464_v57 = vadd.f32 %v463_v45, %v462_v33  ;;  %v478_v15 = vadd.f32 %v477_v2, %v476_v56  ;;  %v682_v2 = vld [vmem:[%s1703_s0] sm:$0xff] (!%p986_p12) }
 0x1c1   : > { %v485_v29 = vrot.slane %v457_v20, 4  ;;  %v481_v49 = vrot.slane %v480_v37, 2  ;;  %v465_v3 = vrot.slane %v464_v57, 1 }
 0x1c2   : > { %v438_v21 = vpop.permute.xlu1 %437 }
 0x1c3   : > { %v458_v26 = vmul.f32 %v1007_v17, %v438_v21  ;;  %v486_v40 = vadd.f32 %v485_v29, %v457_v20  ;;  %v482_v59 = vadd.f32 %v481_v49, %v480_v37  ;;  %v466_v16 = vadd.f32 %v465_v3, %v464_v57  ;;  %v683_v3 = vld [vmem:[%s1703_s0 + $0x8] sm:$0xff] (!%p986_p12) }
 0x1c5   : > { %v491_v30 = vrot.slane %v458_v26, 4  ;;  %v487_v51 = vrot.slane %v486_v40, 2  ;;  %v483_v6 = vrot.slane %v482_v59, 1 }
 0x1c6   : > { %v445_v31 = vpop.permute.xlu1 %444 }
 0x1c7   : > { %v459_v34 = vmul.f32 %v1010_v27, %v445_v31  ;;  %v512_v35 = vpop.xlane.xlu0 %511  ;;  %v492_v42 = vadd.f32 %v491_v30, %v458_v26  ;;  %v488_v61 = vadd.f32 %v487_v51, %v486_v40  ;;  %v484_v18 = vadd.f32 %v483_v6, %v482_v59 }
 0x1c8   : > { %v513_v38 = vmax.f32 %v512_v35, 1e-09 }
 0x1c9   : > { %v497_v41 = vrot.slane %v459_v34, 4  ;;  %v493_v54 = vrot.slane %v492_v42, 2  ;;  %v489_v8 = vrot.slane %v488_v61, 1 }
 0x1ca   : > { %1210 = vrcp.f32 %v513_v38  ;;  %v452_v43 = vpop.permute.xlu1 %451 }
 0x1cb   : > { %v498_v46 = vadd.f32 %v497_v41, %v459_v34  ;;  %v460_v47 = vmul.f32 %v1011_v36, %v452_v43  ;;  %v410_v48 = vpop.permute.xlu0 %409  ;;  %v494_v0 = vadd.f32 %v493_v54, %v492_v42  ;;  %v490_v22 = vadd.f32 %v489_v8, %v488_v61 }
 0x1cc   : > { %v454_v50 = vmul.f32 %v999_v39, %v410_v48 }
 0x1cd   : > { %v499_v52 = vrot.slane %v498_v46, 2  ;;  %v503_v53 = vrot.slane %v460_v47, 4  ;;  %v495_v11 = vrot.slane %v494_v0, 1 }
 0x1ce   : > { %v467_v55 = vrot.slane %v454_v50, 4 }
 0x1cf   : > { %v504_v58 = vadd.f32 %v503_v53, %v460_v47  ;;  %v500_v62 = vadd.f32 %v499_v52, %v498_v46  ;;  %v496_v28 = vadd.f32 %v495_v11, %v494_v0  ;;  %v984_v52 = vld [vmem:[%s1708_s5] ss:$0 sm:$0xff] }
 0x1d0   : > { %v468_v60 = vadd.f32 %v467_v55, %v454_v50 }
 0x1d1   : > { %v505_v63 = vrot.slane %v504_v58, 2  ;;  %v501_v9 = vrot.slane %v500_v62, 1 }
 0x1d2   : > { %v469_v1 = vrot.slane %v468_v60, 2 }
 0x1d3   : > { %v506_v4 = vadd.f32 %v505_v63, %v504_v58  ;;  %v502_v24 = vadd.f32 %v501_v9, %v500_v62 }
 0x1d4   : > { %v1211_v5 = vpop.eup %1210  ;;  %v470_v7 = vadd.f32 %v469_v1, %v468_v60 }
 0x1d5   : > { %v517_v10 = vrot.slane %v1211_v5, 2  ;;  %v507_v12 = vrot.slane %v506_v4, 1  ;;  %v518_v14 = vrot.slane %v1211_v5, 3  ;;  %v519_v17 = vrot.slane %v1211_v5, 4 }
 0x1d6   : > { %v471_v13 = vrot.slane %v470_v7, 1  ;;  %v516_v19 = vrot.slane %v1211_v5, 1  ;;  %v520_v21 = vrot.slane %v1211_v5, 5  ;;  %v521_v26 = vrot.slane %v1211_v5, 6 }
 0x1d7   : > { %v533_v27 = vmul.f32 %v517_v10, %v478_v15  ;;  %v508_v29 = vadd.f32 %v507_v12, %v506_v4  ;;  %v534_v31 = vmul.f32 %v518_v14, %v484_v18  ;;  %v535_v32 = vmul.f32 %v519_v17, %v490_v22 }
 0x1d8   : > { %v472_v20 = vadd.f32 %v471_v13, %v470_v7  ;;  %v531_v33 = vmul.f32 %v1211_v5, %v466_v16  ;;  %v522_v35 = vrot.slane %v1211_v5, 7  ;;  %v536_v36 = vmul.f32 %v520_v21, %v496_v28 }
 0x1d9   : > { %v537_v37 = vmul.f32 %v521_v26, %v502_v24  ;;  %v573_v38 = vrot.slane %v533_v27, 6  ;;  %v576_v41 = vrot.slane %v534_v31, 5  ;;  %v579_v43 = vrot.slane %v535_v32, 4 }
 0x1da   : > { %v532_v30 = vmul.f32 %v516_v19, %v472_v20  ;;  %v538_v40 = vmul.f32 %v522_v35, %v508_v29  ;;  %v582_v45 = vrot.slane %v536_v36, 3  ;;  %v684_v4 = vmul.f32 (!%p986_p12), %v682_v2, %v682_v2 }
 0x1db   : > { %v585_v47 = vrot.slane %v537_v37, 2  ;;  %v685_v5 = vmul.f32 (!%p986_p12), %v683_v3, %v683_v3  ;;  %v793_v32 = vand.u32 (!%p986_p12), 127, %v397_v23  ;;  %v791_v37 = vadd.s32 (!%p986_p12), 8, %v1645_v25 }
 0x1dc   : > { %v570_v34 = vrot.slane %v532_v30, 7  ;;  %v588_v49 = vrot.slane %v538_v40, 1  ;;  %v811_v40 = vstv (!%p986_p12), %s989_s22 }
 0x1dd   : > { %vm794_vm3 = vcmp.ge.s32.totalorder (!%p986_p12), %v793_v32, 16  ;;  %vm796_vm4 = vcmp.eq.s32.totalorder (!%p986_p12), %v793_v32, %v791_v37 }
 0x1de   : > { %v572_v39 = vsel %vm571_vm6, %v570_v34, %v531_v33  ;;  %v805_v33 = vstv (!%p986_p12), %s803_s16  ;;  %v806_v34 = vstv (!%p986_p12), %s987_s17  ;;  %vm795_vm6 = vcmp.eq.s32.totalorder (!%p986_p12), %v793_v32, %v1645_v25 }
 0x1df   : > { %v575_v42 = vsel %vm574_vm7, %v573_v38, %v572_v39  ;;  %v807_v35 = vsel (!%p986_p12), %vm794_vm3, %v805_v33, %v806_v34  ;;  %v798_v38 = vadd.s32 (!%p986_p12), 16, %v791_v37  ;;  %v810_v39 = vstv (!%p986_p12), %s988_s30 }
 0x1e0   : > { %v578_v44 = vsel %vm577_vm8, %v576_v41, %v575_v42  ;;  %v813_v36 = vmul.f32 (!%p986_p12), 1.442695, %v807_v35  ;;  %v797_v42 = vadd.s32 (!%p986_p12), 16, %v1645_v25  ;;  %v812_v23 = vsel (!%p986_p12), %vm794_vm3, %v810_v39, %v811_v40 }
 0x1e1   : > { %v581_v46 = vsel %vm580_vm9, %v579_v43, %v578_v44  ;;  %vm800_vm5 = vcmp.eq.s32.totalorder (!%p986_p12), %v793_v32, %v798_v38 }
 0x1e2   : > { %v584_v48 = vsel %vm583_vm10, %v582_v45, %v581_v46  ;;  %vm799_vm7 = vcmp.eq.s32.totalorder (!%p986_p12), %v793_v32, %v797_v42  ;;  %vm802_vm8 = vmor (!%p986_p12), %vm796_vm4, %vm800_vm5  ;;  %vm846_vm10 = vcmask (!%p986_p12), 261120  }
 0x1e3   : > { %v587_v50 = vsel %vm586_vm11, %v585_v47, %v584_v48  ;;  %vm801_vm9 = vmor (!%p986_p12), %vm795_vm6, %vm799_vm7 }
 0x1e4   : > { %v590_v51 = vsel %vm589_vm12, %v588_v49, %v587_v50 }
 0x1e5   : > { %1071 = vmatmul.mubr.f32.vlgmr.msra.gmra.mrb[0].mxu0 %v590_v51 }
 0x2b8   : > { %v658_v53 = vpop.f32.mrb[0].mxu0 }
 0x2b9   : > { %v659_v54 = vadd.f32 %v984_v52, %v658_v53  ;;  %v1072_v55 = vpop.f32.mrb[1].mxu0 }
 0x2bb   : > { %v663_v56 = vmul.f32 %v659_v54, %v659_v54 }
 0x2bd   : > { %664 = vadd.xlane.f32.xlu0 %v663_v56 }
 0x2c1   : > { %686 = vadd.xlane.f32.xlu0 (!%p986_p12), %v684_v4 }
 0x2c5   : > { %688 = vadd.xlane.f32.xlu0 (!%p986_p12), %v685_v5 }
 0x34a   : > { %v665_v57 = vpop.xlane.xlu0 %664 }
 0x34b   : > { %1212 = vrsqrt.f32 %v665_v57  ;;  %vm668_vm13 = vcmp.eq.f32.partialorder %v665_v57, inf  ;;  %v671_v60 = vand.u32 2147483648, %v665_v57  ;;  %vm670_vm14 = vcmp.eq.f32.partialorder %v665_v57, 0.0 }
 0x34e   : > { %v687_v12 = vpop.xlane.xlu0 (!%p986_p12), %686 }
 0x34f   : > { %vm692_vm15 = vcmp.eq.f32.partialorder (!%p986_p12), %v687_v12, inf  ;;  %v695_v16 = vand.u32 (!%p986_p12), 2147483648, %v687_v12  ;;  %vm694_vm0 = vcmp.eq.f32.partialorder (!%p986_p12), %v687_v12, 0.0 }
 0x352   : > { %v689_v13 = vpop.xlane.xlu0 (!%p986_p12), %688 }
 0x353   : > { %vm699_vm1 = vcmp.eq.f32.partialorder (!%p986_p12), %v689_v13, inf  ;;  %v702_v22 = vand.u32 (!%p986_p12), 2147483648, %v689_v13  ;;  %vm701_vm2 = vcmp.eq.f32.partialorder (!%p986_p12), %v689_v13, 0.0 }
 0x355   : > { %v1213_v58 = vpop.eup %1212 }
 0x356   : > { %v667_v59 = vmul.f32 %v1213_v58, %v665_v57 }
 0x358   : > { %v669_v61 = vsel %vm668_vm13, %v665_v57, %v667_v59 }
 0x359   : > { %v672_v62 = vsel %vm670_vm14, %v671_v60, %v669_v61 }
 0x35a   : > { %v673_v63 = vadd.f32 1e-08, %v672_v62  ;;  %v842_v62 = vstv (!%p986_p12), %s990_s23 }
 0x35b   : > { %v843_v5 = vsel (!%p986_p12), %vm794_vm3, %v842_v62, 1.0 }
 0x35c   : > { %1214 = vrcp.f32 %v673_v63 }
 0x35d   : > { %1216 = vrsqrt.f32 (!%p986_p12), %v687_v12 }
 0x35e   : > { %1218 = vrsqrt.f32 (!%p986_p12), %v689_v13 }
 0x363   : > { %681 = sbr.rel (%p986_p12) target bundleno = 1367 (0x557), region = 72 }
 0x366   : > { %v1215_v0 = vpop.eup %1214 }
 0x367   : > { %v675_v1 = vmul.f32 %v1215_v0, %v659_v54  ;;  %v1217_v14 = vpop.eup (!%p986_p12), %1216 }
 0x368   : > { %v691_v15 = vmul.f32 (!%p986_p12), %v1217_v14, %v687_v12  ;;  %v1219_v18 = vpop.eup (!%p986_p12), %1218 }
 0x369   : > { %677 = vst [vmem:[%s676_s6] sm:$0xff] %v675_v1  ;;  %v698_v20 = vmul.f32 (!%p986_p12), %v1219_v18, %v689_v13 }
 0x36a   : > { %v693_v17 = vsel %vm692_vm15, %v687_v12, %v691_v15 }
 0x36b   : > { %v696_v19 = vsel %vm694_vm0, %v695_v16, %v693_v17  ;;  %v700_v24 = vsel %vm699_vm1, %v689_v13, %v698_v20 }
 0x36c   : > { %v704_v21 = vadd.f32 1e-08, %v696_v19  ;;  %v703_v26 = vsel %vm701_vm2, %v702_v22, %v700_v24 }
 0x36d   : > { %v705_v27 = vadd.f32 1e-08, %v703_v26 }
 0x36e   : > { %1220 = vrcp.f32 %v704_v21 }
 0x36f   : > { %1222 = vrcp.f32 %v705_v27 }
 0x370   : > { %v710_v6 = vld [vmem:[#allocation2] sm:$0xff]  ;;  %v711_v7 = vld [vmem:[#allocation2 + $0x8] sm:$0xff]  ;;  %v712_v9 = vld [vmem:[#allocation2 + $0x10] sm:$0xff]  ;;  %1224 = vpow2.f32 %v813_v36 }
 0x371   : > { %v1108_v8 = vpack.c.bf16 %v711_v7, %v710_v6  ;;  %v713_v10 = vld [vmem:[#allocation2 + $0x18] sm:$0xff] }
 0x372   : > { %v1112_v11 = vpack.c.bf16 %v713_v10, %v712_v9 }
 0x373   : > { %1109 = vmatprep.subr.bf16.mxu0 %v1108_v8 }
 0x374   : > { %1111 = vmatpush3.bf16.xpose.msra.mxu0 %v1108_v8 }
 0x375   : > { %1113 = vmatprep.subr.bf16.mxu0 %v1112_v11 }
 0x378   : > { %v1221_v28 = vpop.eup %1220 }
 0x379   : > { %v708_v29 = vmul.f32 %v1221_v28, %v682_v2  ;;  %v1223_v30 = vpop.eup %1222 }
 0x37a   : > { %v709_v31 = vmul.f32 %v1223_v30, %v683_v3  ;;  %v1225_v41 = vpop.eup %1224 }
 0x37b   : > { %1081 = vmatprep.mubr.f32.mxu0 %v708_v29 }
 0x37c   : > { %1115 = vmatpush3.bf16.xpose.msra.mxu0 %v1112_v11 }
 0x383   : > { %1082 = vmatmul.mubr.f32.vlgmr.msra.gmra.mrb[0].mxu0 %v709_v31 }
 0x456   : > { %v1083_v43 = vpop.f32.mrb[0].mxu0 }
 0x457   : > { %v816_v44 = vmul.f32 %v1225_v41, %v1083_v43  ;;  %v780_v45 = vpop.f32.mrb[1].mxu0 }
 0x458   : > { %v815_v46 = vmul.f32 %v1225_v41, %v780_v45 }
 0x459   : > { %v818_v47 = vadd.f32 %v816_v44, %v812_v23 }
 0x45a   : > { %v817_v48 = vadd.f32 %v815_v46, %v812_v23 }
 0x45b   : > { %v820_v49 = vsub.f32 0.0, %v818_v47 }
 0x45c   : > { %v819_v50 = vsub.f32 0.0, %v817_v48 }
 0x45d   : > { %v822_v51 = vsel %vm802_vm8, %v818_v47, %v820_v49 }
 0x45e   : > { %v826_v52 = vand.u32 2147483647, %v822_v51  ;;  %v821_v53 = vsel %vm801_vm9, %v817_v48, %v819_v50  ;;  %v824_v1 = vmin.f32 %v822_v51, 0.0 }
 0x45f   : > { %v825_v54 = vand.u32 2147483647, %v821_v53  ;;  %v823_v3 = vmin.f32 %v821_v53, 0.0 }
 0x460   : > { %v828_v55 = vsub.f32 0.0, %v826_v52 }
 0x461   : > { %v827_v56 = vsub.f32 0.0, %v825_v54 }
 0x462   : > { %v831_v57 = vmul.f32 1.442695, %v828_v55 }
 0x463   : > { %v829_v58 = vmul.f32 1.442695, %v827_v56 }
 0x464   : > { %1226 = vpow2.f32 %v831_v57 }
 0x465   : > { %1228 = vpow2.f32 %v829_v58 }
 0x46e   : > { %v1227_v59 = vpop.eup %1226 }
 0x46f   : > { %v1229_v25 = vpop.eup %1228  ;;  %v834_v60 = vadd.f32 1.0, %v1227_v59 }
 0x470   : > { %v833_v61 = vadd.f32 1.0, %v1229_v25 }
 0x471   : > { %1230 = vlog2.f32 %v834_v60 }
 0x472   : > { %1232 = vlog2.f32 %v833_v61 }
 0x47b   : > { %v1231_v63 = vpop.eup %1230 }
 0x47c   : > { %v1233_v0 = vpop.eup %1232  ;;  %v838_v2 = vmul.f32 0.6931472, %v1231_v63 }
 0x47d   : > { %v836_v4 = vmul.f32 0.6931472, %v1233_v0 }
 0x47e   : > { %v840_v6 = vsub.f32 %v824_v1, %v838_v2 }
 0x47f   : > { %v839_v7 = vsub.f32 %v823_v3, %v836_v4 }
 0x480   : > { %v845_v8 = vmul.f32 %v843_v5, %v840_v6 }
 0x481   : > { %v844_v9 = vmul.f32 %v843_v5, %v839_v7 }
 0x482   : > { %v848_v10 = vsel %vm846_vm10, %v845_v8, 0.0 }
 0x483   : > { %v847_v11 = vsel %vm846_vm10, %v844_v9, 0.0 }
 0x484   : > { %v849_v12 = vadd.f32 %v848_v10, %v847_v11 }
 0x486   : > { %850 = vadd.xlane.f32.xlu1 %v849_v12 }
 0x513   : > { %v851_v13 = vpop.xlane.xlu1 %850 }
 0x514   : > { %v852_v14 = vrot.slane %v851_v13, 4 }
 0x516   : > { %v853_v15 = vadd.f32 %v852_v14, %v851_v13 }
 0x518   : > { %v854_v16 = vrot.slane %v853_v15, 2 }
 0x51a   : > { %v855_v17 = vadd.f32 %v854_v16, %v853_v15 }
 0x51c   : > { %v856_v18 = vrot.slane %v855_v17, 1 }
 0x51e   : > { %v857_v19 = vadd.f32 %v856_v18, %v855_v17 }
 0x520   : > { %1116 = vpush %v857_v19 }
 0x551   : > { %s1117_s8 = spop %1116 }
 0x552   : > { %s859_s13 = ssub.f32 0.0, %s1117_s8 }
 0x554   : > { %s862_s27 = smul.f32 0.0625, %s859_s13 }
 0x556   : > { %864 = sst [smem:[#allocation11]] %s862_s27 }
 0x557 PF: > { %p1157_p6 = scmp.eq.s32.totalorder %s1470_s28, 1  ;;  %s1335_s11 = scalar_lea.hbm %s1710_s7, 16 }
 0x558   : > { %p1336_p11 = scmp.ne.s32.totalorder %s1710_s7, %s1335_s11  ;;  %p1341_p7 = scmp.lt.u32.totalorder %s1335_s11, %s1710_s7 }
 0x55a   : > { %p1337_p13 = pnand %p1336_p11, %p1157_p6 }
 0x55c   : > { %p1338_p4 = pneg %p1337_p13 }
 0x55e   : > { %p1343_p5 = pnand %p1341_p7, %p1338_p4 }
 0x560   : > { %1346 = shalt.err (!%p1343_p5)
}
 0x561   : > { %s1410_s14 = smov [#allocation11]  }
 0x562   : > { %1133 = dma.smem_to_hbm (%p1157_p6), %s1410_s14, 16, %s1710_s7, [#allocation5]  }
 0x563   : > { %1380 = dma.done.wait (%p1157_p6), [#allocation5], 16  }
 0x564   : > { %1382 = vsyncadd (%p1157_p6), [#allocation5], 4294967280 }
 0x565   : > { %878 = sfence }
 0x566 PF: > { %s1737_s27 = sld [smem:[#allocation17_spill]]  ;;  %s1738_s28 = sld [smem:[#allocation18_spill]] }
 0x567   : > { %s1739_s24 = smov %s1389_s25  ;;  %s1740_s25 = smov %s1393_s26 }
 0x56c   : > { %p20_p8 = scmp.ge.s32.totalorder %s1737_s27, 4   ;;  %s1741_s26 = smov %s1738_s28 }
 0x56e   :  { %22 = sbr.rel (!%p20_p8) target bundleno = 8 (0x8), region = 112 }
 0x575   :  { %884 = vsyncpa [#allocation4], 1 }
 0x576   :  { %886 = vsyncpa [#allocation4 + $0x1], 1 }
 0x577   :  { %887 = vsyncpa [#allocation8], 1 }
 0x578   :  { %889 = vsyncpa [#allocation8 + $0x1], 1 }
 0x579   :  { %890 = vsyncpa [#allocation5], 1 }
 0x57a   :  { %892 = vsyncpa [#allocation5 + $0x1], 1 }
 0x57b   :  { %893 = vsyncpa [#allocation6], 1 }
 0x57c   :  { %895 = vsyncpa [#allocation6 + $0x1], 1 }

</bundles_post_ra>
